<compile_context>
chip_gen: v5e
topology: v5e:2x2
jax: 0.10.0
libtpu: 0.0.40
codegen_flags: <defaults>
</compile_context>

<pallas_src>
import math
import jax
import jax.numpy as jnp
from jax.experimental import pallas as pl
from jax.experimental.pallas import tpu as pltpu

_LOG_2PI = math.log(2.0 * math.pi)


def _round_up(x, m):
    return ((x + m - 1) // m) * m


def _make_fused_kernel(action_dim: int):
    """Fused actor+critic evaluate() kernel: one batch tile per grid step."""

    def kernel(state_ref, action_ref,
               w1_ref, b1_ref, w2_ref, b2_ref, w3_ref, b3_ref,
               dist_const_ref, out_ref):
        x = state_ref[...]                                          # (TB, S)

        # Fused layer 1: [actor 64 | critic 64] -> 128 lanes, single tanh.
        h1 = jnp.tanh(jnp.dot(x, w1_ref[...],
                              preferred_element_type=jnp.float32) + b1_ref[...])
        # Fused layer 2 (block-diagonal): [actor 32 | critic 32].
        h2 = jnp.tanh(jnp.dot(h1, w2_ref[...],
                              preferred_element_type=jnp.float32) + b2_ref[...])
        # Fused layer 3 (block-diagonal): [actor mean pre-tanh (A) | value (1)].
        y3 = jnp.dot(h2, w3_ref[...],
                     preferred_element_type=jnp.float32) + b3_ref[...]

        mean = jnp.tanh(y3[:, :action_dim])                         # (TB, A)
        value = y3[:, action_dim:action_dim + 1]                    # (TB, 1), no tanh

        # Distribution constants (computed once in the wrapper).
        inv_var = dist_const_ref[:, :action_dim]                    # (1, A)
        logp_shift = dist_const_ref[:, action_dim:action_dim + 1]   # (1, 1)

        # MultivariateNormal(mean, diag(var)).log_prob(action):
        #   -0.5 * diff^T diag(1/var) diff + const
        diff = action_ref[...] - mean                               # (TB, A)
        maha = jnp.sum(diff * diff * inv_var,
                       axis=-1, keepdims=True)                      # (TB, 1)
        logp = logp_shift - 0.5 * maha                              # (TB, 1)

        out_ref[...] = jnp.concatenate([logp, value], axis=-1)      # (TB, 2)

    return kernel


def fuse_params(params):
    """Pack actor+critic weights into one MLP with block-diagonal layers."""
    f32 = jnp.float32
    w2a, w2c = params["w2a"], params["w2c"]
    w3a, w3c = params["w3a"], params["w3c"]
    return {
        "w1": jnp.concatenate([params["w1a"], params["w1c"]], axis=1),      # (S, 128)
        "b1": jnp.concatenate([params["b1a"], params["b1c"]])[None, :],     # (1, 128)
        "w2": jnp.concatenate([
            jnp.concatenate([w2a, jnp.zeros((w2a.shape[0], w2c.shape[1]), f32)], axis=1),
            jnp.concatenate([jnp.zeros((w2c.shape[0], w2a.shape[1]), f32), w2c], axis=1),
        ], axis=0),                                                          # (128, 64)
        "b2": jnp.concatenate([params["b2a"], params["b2c"]])[None, :],     # (1, 64)
        "w3": jnp.concatenate([
            jnp.concatenate([w3a, jnp.zeros((w3a.shape[0], w3c.shape[1]), f32)], axis=1),
            jnp.concatenate([jnp.zeros((w3c.shape[0], w3a.shape[1]), f32), w3c], axis=1),
        ], axis=0),                                                          # (64, A+1)
        "b3": jnp.concatenate([params["b3a"], params["b3c"]])[None, :],     # (1, A+1)
    }


def actor_critic_evaluate(state, action, params, action_var, *, tile_b=2048):
    """Pallas-fused equivalent of ActorCritic.evaluate(state, action).

    Returns (action_logprobs (B,), state_value (B,), dist_entropy (B,)).
    """
    B, S = state.shape
    A = action.shape[-1]
    fused = fuse_params(params)

    # Distribution constants: depend only on action_var -> hoisted out of the
    # per-row path (no divides / logs inside the kernel). Packed into one tile.
    inv_var = (1.0 / action_var).astype(jnp.float32)                       # (A,)
    logdet = jnp.sum(jnp.log(action_var))
    logp_shift = (-0.5 * (logdet + A * _LOG_2PI)).astype(jnp.float32)
    dist_const = jnp.concatenate([inv_var, logp_shift[None]])[None, :]     # (1, A+1)

    # Batch tiling (pad rows with zeros; padded rows are sliced off below).
    tile_b = min(tile_b, _round_up(B, 8))
    b_pad = _round_up(B, tile_b)
    if b_pad != B:
        state = jnp.pad(state, ((0, b_pad - B), (0, 0)))
        action = jnp.pad(action, ((0, b_pad - B), (0, 0)))
    n_tiles = b_pad // tile_b

    def batch_spec(feat):
        return pl.BlockSpec((tile_b, feat), lambda i: (i, 0))

    def const_spec(arr):
        return pl.BlockSpec(arr.shape, lambda i: (0, 0))   # weights stay resident

    out = pl.pallas_call(
        _make_fused_kernel(A),
        out_shape=jax.ShapeDtypeStruct((b_pad, 2), jnp.float32),
        grid=(n_tiles,),
        in_specs=[
            batch_spec(S),                 # state
            batch_spec(A),                 # action
            const_spec(fused["w1"]),
            const_spec(fused["b1"]),
            const_spec(fused["w2"]),
            const_spec(fused["b2"]),
            const_spec(fused["w3"]),
            const_spec(fused["b3"]),
            const_spec(dist_const),
        ],
        out_specs=batch_spec(2),           # [logp | value] fused output
        compiler_params=pltpu.CompilerParams(
            dimension_semantics=("parallel",)),
    )(state, action,
      fused["w1"], fused["b1"], fused["w2"], fused["b2"],
      fused["w3"], fused["b3"], dist_const)

    logp = out[:B, 0]
    value = out[:B, 1]
    # Entropy of N(mean, diag(var)) is independent of state/action -> wrapper.
    ent_scalar = 0.5 * A * (1.0 + _LOG_2PI) + 0.5 * logdet
    ent = jnp.full((B,), ent_scalar, jnp.float32)
    return logp, value, ent


def init_params(key, state_dim, action_dim):
    """Deterministic synthetic init mimicking PyTorch Linear default (uniform ±1/sqrt(fan_in)).
    Weights are stored transposed: (in_features, out_features)."""
    dims_actor = [(state_dim, 64), (64, 32), (32, action_dim)]
    dims_critic = [(state_dim, 64), (64, 32), (32, 1)]
    params = {}
    keys = jax.random.split(key, 12)
    k = 0
    for prefix, dims in (("a", dims_actor), ("c", dims_critic)):
        for i, (fan_in, fan_out) in enumerate(dims, start=1):
            bound = 1.0 / math.sqrt(fan_in)
            params[f"w{i}{prefix}"] = jax.random.uniform(
                keys[k], (fan_in, fan_out), jnp.float32, -bound, bound)
            params[f"b{i}{prefix}"] = jax.random.uniform(
                keys[k + 1], (fan_out,), jnp.float32, -bound, bound)
            k += 2
    return params


def _reference_evaluate(state, action, params, action_var):
    """Pure-JAX reference (same math, no Pallas) for a correctness check."""
    h = jnp.tanh(state @ params["w1a"] + params["b1a"])
    h = jnp.tanh(h @ params["w2a"] + params["b2a"])
    mean = jnp.tanh(h @ params["w3a"] + params["b3a"])
    hc = jnp.tanh(state @ params["w1c"] + params["b1c"])
    hc = jnp.tanh(hc @ params["w2c"] + params["b2c"])
    value = hc @ params["w3c"] + params["b3c"]
    d = action.shape[-1]
    diff = action - mean
    logdet = jnp.sum(jnp.log(action_var))
    maha = jnp.sum(diff * diff / action_var, axis=-1)
    logp = -0.5 * (maha + logdet + d * _LOG_2PI)
    ent = jnp.full((state.shape[0],), 0.5 * d * (1.0 + _LOG_2PI) + 0.5 * logdet)
    return logp, value[:, 0], ent


if __name__ == "__main__":
    STATE_DIM, ACTION_DIM = 8, 4
    ACTION_STD = 0.5

    key = jax.random.PRNGKey(0)
    k_state, k_action, k_params = jax.random.split(key, 3)
    params = init_params(k_params, STATE_DIM, ACTION_DIM)
    action_var = jnp.full((ACTION_DIM,), ACTION_STD * ACTION_STD, jnp.float32)

    # Small primary check (B=2): single tile.
    B = 2
    state = jax.random.normal(k_state, (B, STATE_DIM), jnp.float32)
    action = jax.random.normal(k_action, (B, ACTION_DIM), jnp.float32)
    logp, value, ent = actor_critic_evaluate(state, action, params, action_var)
    jax.block_until_ready((logp, value, ent))
    r_logp, r_value, r_ent = _reference_evaluate(state, action, params, action_var)
    assert jnp.allclose(logp, r_logp, atol=1e-4, rtol=1e-4)
    assert jnp.allclose(value, r_value, atol=1e-4, rtol=1e-4)
    assert jnp.allclose(ent, r_ent, atol=1e-4, rtol=1e-4)

    # Multi-tile / padding check (grid > 1, non-multiple batch).
    B2 = 600
    state2 = jax.random.normal(jax.random.PRNGKey(7), (B2, STATE_DIM), jnp.float32)
    action2 = jax.random.normal(jax.random.PRNGKey(8), (B2, ACTION_DIM), jnp.float32)
    logp2, value2, ent2 = actor_critic_evaluate(
        state2, action2, params, action_var, tile_b=256)
    jax.block_until_ready((logp2, value2, ent2))
    r_logp2, r_value2, r_ent2 = _reference_evaluate(state2, action2, params, action_var)
    assert jnp.allclose(logp2, r_logp2, atol=1e-4, rtol=1e-4)
    assert jnp.allclose(value2, r_value2, atol=1e-4, rtol=1e-4)
    assert jnp.allclose(ent2, r_ent2, atol=1e-4, rtol=1e-4)

    # TODO(synk): dist.sample() in act() is stochastic RNG sampling; only the
    # deterministic evaluate() forward math is implemented in the kernel.
    # TODO(synk): a bf16 activation path would further speed up the tanh chain
    # on v6e/v7x, but f32 is kept so the same kernel is optimal on v5e too.
    print("KERNEL_OK")
</pallas_src>

<mosaic_0001>
module attributes {stable_mosaic.version = 11 : i64} {
  func.func @kernel(%arg0: i32, %arg1: memref<8x8xf32, #tpu.memory_space<vmem>>, %arg2: memref<8x4xf32, #tpu.memory_space<vmem>>, %arg3: memref<8x128xf32, #tpu.memory_space<vmem>>, %arg4: memref<1x128xf32, #tpu.memory_space<vmem>>, %arg5: memref<128x64xf32, #tpu.memory_space<vmem>>, %arg6: memref<1x64xf32, #tpu.memory_space<vmem>>, %arg7: memref<64x5xf32, #tpu.memory_space<vmem>>, %arg8: memref<1x5xf32, #tpu.memory_space<vmem>>, %arg9: memref<1x5xf32, #tpu.memory_space<vmem>>, %arg10: memref<8x2xf32, #tpu.memory_space<vmem>>) attributes {dimension_semantics = [#tpu.dimension_semantics<parallel>], iteration_bounds = array<i64: 1>, scalar_prefetch = 0 : i64, scratch_operands = 0 : i64, tpu.core_type = #tpu.core_type<tc>, window_params = [{transform_indices = @transform_0, window_bounds = array<i64: 8, 8>}, {transform_indices = @transform_1, window_bounds = array<i64: 8, 4>}, {pipeline_mode = #tpu.pipeline_mode<synchronous>, transform_indices = @transform_2, window_bounds = array<i64: 8, 128>}, {pipeline_mode = #tpu.pipeline_mode<synchronous>, transform_indices = @transform_3, window_bounds = array<i64: 1, 128>}, {pipeline_mode = #tpu.pipeline_mode<synchronous>, transform_indices = @transform_4, window_bounds = array<i64: 128, 64>}, {pipeline_mode = #tpu.pipeline_mode<synchronous>, transform_indices = @transform_5, window_bounds = array<i64: 1, 64>}, {pipeline_mode = #tpu.pipeline_mode<synchronous>, transform_indices = @transform_6, window_bounds = array<i64: 64, 5>}, {pipeline_mode = #tpu.pipeline_mode<synchronous>, transform_indices = @transform_7, window_bounds = array<i64: 1, 5>}, {pipeline_mode = #tpu.pipeline_mode<synchronous>, transform_indices = @transform_8, window_bounds = array<i64: 1, 5>}, {transform_indices = @transform_9, window_bounds = array<i64: 8, 2>}]} {
    %c0 = arith.constant 0 : index
    %c0_0 = arith.constant 0 : index
    %0 = vector.load %arg1[%c0, %c0_0] : memref<8x8xf32, #tpu.memory_space<vmem>>, vector<8x8xf32>
    %c0_1 = arith.constant 0 : index
    %c0_2 = arith.constant 0 : index
    %1 = vector.load %arg3[%c0_1, %c0_2] : memref<8x128xf32, #tpu.memory_space<vmem>>, vector<8x128xf32>
    %cst = arith.constant dense<0.000000e+00> : vector<8x128xf32>
    %2 = tpu.matmul %0, %1, %cst {dimension_numbers = #tpu.dot_dimension_numbers<[1], [0], [0], [1], [0, 0, 1, 1], [], []>} : vector<8x8xf32>, vector<8x128xf32>, vector<8x128xf32> -> vector<8x128xf32>
    %c0_3 = arith.constant 0 : index
    %c0_4 = arith.constant 0 : index
    %3 = vector.load %arg4[%c0_3, %c0_4] : memref<1x128xf32, #tpu.memory_space<vmem>>, vector<1x128xf32>
    %4 = vector.broadcast %3 : vector<1x128xf32> to vector<8x128xf32>
    %5 = arith.addf %2, %4 : vector<8x128xf32>
    %6 = math.tanh %5 : vector<8x128xf32>
    %c0_5 = arith.constant 0 : index
    %c0_6 = arith.constant 0 : index
    %7 = vector.load %arg5[%c0_5, %c0_6] : memref<128x64xf32, #tpu.memory_space<vmem>>, vector<128x64xf32>
    %cst_7 = arith.constant dense<0.000000e+00> : vector<8x64xf32>
    %8 = tpu.matmul %6, %7, %cst_7 {dimension_numbers = #tpu.dot_dimension_numbers<[1], [0], [0], [1], [0, 0, 1, 1], [], []>} : vector<8x128xf32>, vector<128x64xf32>, vector<8x64xf32> -> vector<8x64xf32>
    %c0_8 = arith.constant 0 : index
    %c0_9 = arith.constant 0 : index
    %9 = vector.load %arg6[%c0_8, %c0_9] : memref<1x64xf32, #tpu.memory_space<vmem>>, vector<1x64xf32>
    %10 = vector.broadcast %9 : vector<1x64xf32> to vector<8x64xf32>
    %11 = arith.addf %8, %10 : vector<8x64xf32>
    %12 = math.tanh %11 : vector<8x64xf32>
    %c0_10 = arith.constant 0 : index
    %c0_11 = arith.constant 0 : index
    %13 = vector.load %arg7[%c0_10, %c0_11] : memref<64x5xf32, #tpu.memory_space<vmem>>, vector<64x5xf32>
    %cst_12 = arith.constant dense<0.000000e+00> : vector<8x5xf32>
    %14 = tpu.matmul %12, %13, %cst_12 {dimension_numbers = #tpu.dot_dimension_numbers<[1], [0], [0], [1], [0, 0, 1, 1], [], []>} : vector<8x64xf32>, vector<64x5xf32>, vector<8x5xf32> -> vector<8x5xf32>
    %c0_13 = arith.constant 0 : index
    %c0_14 = arith.constant 0 : index
    %15 = vector.load %arg8[%c0_13, %c0_14] : memref<1x5xf32, #tpu.memory_space<vmem>>, vector<1x5xf32>
    %16 = vector.broadcast %15 : vector<1x5xf32> to vector<8x5xf32>
    %17 = arith.addf %14, %16 : vector<8x5xf32>
    %18 = vector.extract_strided_slice %17 {offsets = [0, 0], sizes = [8, 4], strides = [1, 1]} : vector<8x5xf32> to vector<8x4xf32>
    %19 = math.tanh %18 : vector<8x4xf32>
    %20 = vector.extract_strided_slice %17 {offsets = [0, 4], sizes = [8, 1], strides = [1, 1]} : vector<8x5xf32> to vector<8x1xf32>
    %c0_15 = arith.constant 0 : index
    %c0_16 = arith.constant 0 : index
    %21 = vector.load %arg9[%c0_15, %c0_16] : memref<1x5xf32, #tpu.memory_space<vmem>>, vector<1x4xf32>
    %c0_17 = arith.constant 0 : index
    %c4 = arith.constant 4 : index
    %22 = vector.load %arg9[%c0_17, %c4] : memref<1x5xf32, #tpu.memory_space<vmem>>, vector<1x1xf32>
    %c0_18 = arith.constant 0 : index
    %c0_19 = arith.constant 0 : index
    %23 = vector.load %arg2[%c0_18, %c0_19] : memref<8x4xf32, #tpu.memory_space<vmem>>, vector<8x4xf32>
    %24 = arith.subf %23, %19 : vector<8x4xf32>
    %25 = arith.mulf %24, %24 : vector<8x4xf32>
    %26 = vector.broadcast %21 : vector<1x4xf32> to vector<8x4xf32>
    %27 = arith.mulf %25, %26 : vector<8x4xf32>
    %cst_20 = arith.constant dense<0.000000e+00> : vector<8xf32>
    %28 = vector.multi_reduction <add>, %27, %cst_20 [1] : vector<8x4xf32> to vector<8xf32>
    %29 = vector.shape_cast %28 : vector<8xf32> to vector<8x1xf32>
    %cst_21 = arith.constant 5.000000e-01 : f32
    %30 = vector.broadcast %cst_21 : f32 to vector<8x1xf32>
    %31 = arith.mulf %30, %29 : vector<8x1xf32>
    %32 = vector.broadcast %22 : vector<1x1xf32> to vector<8x1xf32>
    %33 = arith.subf %32, %31 : vector<8x1xf32>
    %34 = tpu.concatenate %33, %20 in 1 : vector<8x1xf32>, vector<8x1xf32> -> vector<8x2xf32>
    %c0_22 = arith.constant 0 : index
    %c0_23 = arith.constant 0 : index
    %35 = vector.load %arg10[%c0_22, %c0_23] : memref<8x2xf32, #tpu.memory_space<vmem>>, vector<8x2xf32>
    tpu.vector_store %arg10[%c0_22, %c0_23], %34 {strides = array<i32>} : memref<8x2xf32, #tpu.memory_space<vmem>>, vector<8x2xf32>,
    return
  }
  func.func @transform_0(%arg0: i32) -> (i32, i32) {
    %c0_i32 = arith.constant 0 : i32
    %c0_i32_0 = arith.constant 0 : i32
    return %arg0, %c0_i32 : i32, i32
  }
  func.func @transform_1(%arg0: i32) -> (i32, i32) {
    %c0_i32 = arith.constant 0 : i32
    %c0_i32_0 = arith.constant 0 : i32
    return %arg0, %c0_i32 : i32, i32
  }
  func.func @transform_2(%arg0: i32) -> (i32, i32) {
    %c0_i32 = arith.constant 0 : i32
    %c0_i32_0 = arith.constant 0 : i32
    %c0_i32_1 = arith.constant 0 : i32
    return %c0_i32, %c0_i32_0 : i32, i32
  }
  func.func @transform_3(%arg0: i32) -> (i32, i32) {
    %c0_i32 = arith.constant 0 : i32
    %c0_i32_0 = arith.constant 0 : i32
    %c0_i32_1 = arith.constant 0 : i32
    return %c0_i32, %c0_i32_0 : i32, i32
  }
  func.func @transform_4(%arg0: i32) -> (i32, i32) {
    %c0_i32 = arith.constant 0 : i32
    %c0_i32_0 = arith.constant 0 : i32
    %c0_i32_1 = arith.constant 0 : i32
    return %c0_i32, %c0_i32_0 : i32, i32
  }
  func.func @transform_5(%arg0: i32) -> (i32, i32) {
    %c0_i32 = arith.constant 0 : i32
    %c0_i32_0 = arith.constant 0 : i32
    %c0_i32_1 = arith.constant 0 : i32
    return %c0_i32, %c0_i32_0 : i32, i32
  }
  func.func @transform_6(%arg0: i32) -> (i32, i32) {
    %c0_i32 = arith.constant 0 : i32
    %c0_i32_0 = arith.constant 0 : i32
    %c0_i32_1 = arith.constant 0 : i32
    return %c0_i32, %c0_i32_0 : i32, i32
  }
  func.func @transform_7(%arg0: i32) -> (i32, i32) {
    %c0_i32 = arith.constant 0 : i32
    %c0_i32_0 = arith.constant 0 : i32
    %c0_i32_1 = arith.constant 0 : i32
    return %c0_i32, %c0_i32_0 : i32, i32
  }
  func.func @transform_8(%arg0: i32) -> (i32, i32) {
    %c0_i32 = arith.constant 0 : i32
    %c0_i32_0 = arith.constant 0 : i32
    %c0_i32_1 = arith.constant 0 : i32
    return %c0_i32, %c0_i32_0 : i32, i32
  }
  func.func @transform_9(%arg0: i32) -> (i32, i32) {
    %c0_i32 = arith.constant 0 : i32
    %c0_i32_0 = arith.constant 0 : i32
    return %arg0, %c0_i32 : i32, i32
  }
}

</mosaic_0001>

<bundles_post_ra>
// kernel: tpu_custom_call.1
= control target key start
LH: loop header
LB: loop body
LE: loop exit
PB: predicated region body
PF: predicated region fallthrough
CT: control target
= control target key end

     0   :  { %vm38_vm0 = vcmask 64512   ;;  %vm116_vm1 = vcmask 523264   ;;  %vm149_vm2 = vcmask 31744   ;;  %vm163_vm3 = vcmask 7168   ;;  %s333_s2 = inlined_call_operand.vmem [shape: f32[8,128], index: 2, kind: input, shape index: {}]   ;;  %s334_s0 = inlined_call_operand.vmem [shape: f32[8,8], index: 0, kind: input, shape index: {}]   ;;  %s335_s4 = inlined_call_operand.vmem [shape: f32[128,64], index: 4, kind: input, shape index: {}]   ;;  %s336_s3 = inlined_call_operand.vmem [shape: f32[1,128], index: 3, kind: input, shape index: {}]   ;;  %s337_s5 = inlined_call_operand.vmem [shape: f32[1,64], index: 5, kind: input, shape index: {}]   ;;  %s338_s6 = inlined_call_operand.vmem [shape: f32[64,5], index: 6, kind: input, shape index: {}]   ;;  %s339_s7 = inlined_call_operand.vmem [shape: f32[1,5], index: 7, kind: input, shape index: {}]   ;;  %s340_s8 = inlined_call_operand.vmem [shape: f32[1,5], index: 8, kind: input, shape index: {}]   ;;  %s341_s1 = inlined_call_operand.vmem [shape: f32[8,4], index: 1, kind: input, shape index: {}]   ;;  %s342_s9 = inlined_call_operand.vmem [shape: f32[8,2], index: 9, kind: output, shape index: {}]  }
   0x1   :  { %v33_v0 = vld [vmem:[%s333_s2] sm:$0xff]  ;;  %v78_v2 = vld [vmem:[%s335_s4 + $0x78] sm:$0xff]  ;;  %v77_v3 = vld [vmem:[%s335_s4 + $0x70] sm:$0xff]  ;;  %vm165_vm4 = vcmask 15360  }
   0x2   :  { %v32_v1 = vld [vmem:[%s334_s0] sm:$0xff]  ;;  %57 = vmatpush.msra.mxu0 %v33_v0  ;;  %83 = vmatpush.msra.mxu1 %v78_v2  ;;  %v76_v4 = vld [vmem:[%s335_s4 + $0x68] sm:$0xff]  ;;  %v74_v6 = vld [vmem:[%s335_s4 + $0x58] sm:$0xff] }
   0x3   :  { %171 = vmatmul.msk.f32.vlgmr.msra.gmra.mxu0 %vm38_vm0, %v32_v1  ;;  %v75_v5 = vld [vmem:[%s335_s4 + $0x60] sm:$0xff]  ;;  %v73_v7 = vld [vmem:[%s335_s4 + $0x50] sm:$0xff]  ;;  %v72_v8 = vld [vmem:[%s335_s4 + $0x48] sm:$0xff] }
   0x4   :  { %84 = vmatpush.msra.mxu1 %v77_v3  ;;  %v71_v9 = vld [vmem:[%s335_s4 + $0x40] sm:$0xff]  ;;  %v70_v10 = vld [vmem:[%s335_s4 + $0x38] sm:$0xff]  ;;  %v69_v11 = vld [vmem:[%s335_s4 + $0x30] sm:$0xff] }
   0x5   :  { %v68_v12 = vld [vmem:[%s335_s4 + $0x28] sm:$0xff]  ;;  %v67_v13 = vld [vmem:[%s335_s4 + $0x20] sm:$0xff]  ;;  %v66_v14 = vld [vmem:[%s335_s4 + $0x18] sm:$0xff] }
   0x6   :  { %85 = vmatpush.msra.mxu1 %v76_v4  ;;  %v65_v15 = vld [vmem:[%s335_s4 + $0x10] sm:$0xff]  ;;  %v64_v16 = vld [vmem:[%s335_s4 + $0x8] sm:$0xff]  ;;  %v63_v17 = vld [vmem:[%s335_s4] sm:$0xff] }
   0x7   :  { %v111_v18 = vld [vmem:[%s338_s6 + $0x38] sm:$0xff]  ;;  %v110_v19 = vld [vmem:[%s338_s6 + $0x30] sm:$0xff]  ;;  %v109_v20 = vld [vmem:[%s338_s6 + $0x28] sm:$0xff] }
   0x8   :  { %86 = vmatpush.msra.mxu1 %v75_v5  ;;  %128 = vmatpush.msra.mxu2 %v111_v18  ;;  %v175_v21 = vld [vmem:[%s336_s3] ss:$0 sm:$0xff]  ;;  %v107_v26 = vld [vmem:[%s338_s6 + $0x18] sm:$0xff]  ;;  %v106_v27 = vld [vmem:[%s338_s6 + $0x10] sm:$0xff] }
   0x9   :  { %v108_v25 = vld [vmem:[%s338_s6 + $0x20] sm:$0xff]  ;;  %v105_v28 = vld [vmem:[%s338_s6 + $0x8] sm:$0xff] }
   0xa   :  { %87 = vmatpush.msra.mxu1 %v74_v6  ;;  %129 = vmatpush.msra.mxu2 %v110_v19  ;;  %v104_v29 = vld [vmem:[%s338_s6] sm:$0xff]  ;;  %s185_s6 = smov 125  }
   0xb   :  { %v176_v30 = vld [vmem:[%s337_s5] ss:$0 sm:$0xff] }
   0xc   :  { %88 = vmatpush.msra.mxu1 %v73_v7  ;;  %130 = vmatpush.msra.mxu2 %v109_v20  ;;  %v177_v34 = vld [vmem:[%s339_s7] ss:$0 sm:$0xff]  ;;  %s186_s7 = smov 124  }
   0xd   :  { %v142_v37 = vld [vmem:[%s341_s1] sm:$0xff] }
   0xe   :  { %89 = vmatpush.msra.mxu1 %v72_v8  ;;  %131 = vmatpush.msra.mxu2 %v108_v25  ;;  %v178_v40 = vld [vmem:[%s340_s8] ss:$0 sm:$0xff] }
  0x10   :  { %90 = vmatpush.msra.mxu1 %v71_v9  ;;  %132 = vmatpush.msra.mxu2 %v107_v26 }
  0x12   :  { %91 = vmatpush.msra.mxu1 %v70_v10  ;;  %133 = vmatpush.msra.mxu2 %v106_v27 }
  0x14   :  { %92 = vmatpush.msra.mxu1 %v69_v11  ;;  %134 = vmatpush.msra.mxu2 %v105_v28 }
  0x16   :  { %93 = vmatpush.msra.mxu1 %v68_v12  ;;  %135 = vmatpush.msra.mxu2 %v104_v29 }
  0x18   :  { %94 = vmatpush.msra.mxu1 %v67_v13 }
  0x1a   :  { %95 = vmatpush.msra.mxu1 %v66_v14 }
  0x1c   :  { %96 = vmatpush.msra.mxu1 %v65_v15 }
  0x1e   :  { %97 = vmatpush.msra.mxu1 %v64_v16 }
  0x20   :  { %98 = vmatpush.msra.mxu1 %v63_v17 }
  0x80   :  { %v59_v22 = vpop.f32.mrf.mxu0 }
  0x81   :  { %v60_v23 = vadd.f32 %v175_v21, %v59_v22 }
  0x83   :  { %179 = vtanh.f32 %v60_v23 }
  0x89   :  { %v180_v24 = vpop.eup %179 }
  0x8a   :  { %99 = vmatmul.f32.vlgmr.msra.gmra.mxu1 %v180_v24 }
 0x107   :  { %v100_v31 = vpop.f32.mrf.mxu1 }
 0x108   :  { %v101_v32 = vadd.f32 %v176_v30, %v100_v31 }
 0x10a   :  { %181 = vtanh.f32 %v101_v32 }
 0x110   :  { %v182_v33 = vpop.eup %181 }
 0x111   :  { %172 = vmatmul.msk.f32.vlgmr.msra.gmra.mxu2 %vm116_vm1, %v182_v33 }
 0x194   :  { %v137_v35 = vpop.f32.mrf.mxu2 }
 0x195   :  { %v138_v36 = vadd.f32 %v177_v34, %v137_v35 }
 0x197   :  { %183 = vtanh.f32 %v138_v36  ;;  %160 = vrot.lane.b32.xlu1 %v138_v36, %s185_s6 }
 0x19d   :  { %v184_v38 = vpop.eup %183 }
 0x19e   :  { %v143_v39 = vsub.f32 %v142_v37, %v184_v38 }
 0x1a0   :  { %v144_v41 = vmul.f32 %v143_v39, %v143_v39 }
 0x1a2   :  { %v148_v42 = vmul.f32 %v178_v40, %v144_v41 }
 0x1a4   :  { %v150_v43 = vsel %vm149_vm2, %v148_v42, 0.0 }
 0x1a5   :  { %151 = vadd.xlane.f32.xlu0 %v150_v43 }
 0x209   :  { %v161_v47 = vpop.permute.xlu1 %160 }
 0x218   :  { %v152_v44 = vpop.xlane.xlu0 %151 }
 0x219   :  { %v153_v45 = vmul.f32 0.5, %v152_v44 }
 0x21b   :  { %v154_v46 = vsub.f32 %v178_v40, %v153_v45 }
 0x21d   :  { %156 = vrot.lane.b32.xlu0 %v154_v46, %s186_s7 }
 0x28f   :  { %v157_v48 = vpop.permute.xlu0 %156 }
 0x290   :  { %v164_v49 = vsel %vm163_vm3, %v157_v48, %v161_v47 }
 0x291   :  { %166 = vst.msk [vmem:[%s342_s9] sm:$0xff] %vm165_vm4, %v164_v49 }

</bundles_post_ra>
